<compile_context>
chip_gen: v7x
topology: tpu7x:2x2x1
jax: 0.10.0
libtpu: 0.0.40
codegen_flags: <defaults>
</compile_context>

<pallas_src>
from functools import partial

import jax
import jax.numpy as jnp
import numpy as np
from jax.experimental import pallas as pl
from jax.experimental.pallas import tpu as pltpu

LN_EPS = 1e-5
BN_EPS = 1e-5


# ----------------------------------------------------------------------------
# Fused kernel.  grid = (T // TB,) ; one grid step handles TB timesteps.
#
#   x_ref  : (TB*N, Din)   node states, T folded into rows
#   pe_ref : (TB*N, 1)     int32 entity ids
#   ei_ref : (1, 2, TB*E)  int32 edge_index, pre-offset by (t % TB)*N
#   ew_ref : (1, 1, TB*E)  f32 edge weights (already scaled by edge_enc_bipartite)
#   wp_ref : (ENT*Din, U)  packed point_enc_w
#   g_ref,b_ref : (1, U)   LayerNorm gamma/beta
#   wl_ref : (U, U)        Linear weight (transposed) with BatchNorm folded in
#   bl_ref : (1, U)        Linear bias with BatchNorm folded in
#   out_ref: (TB*N, U)
# ----------------------------------------------------------------------------
def _spatial_fused_kernel(x_ref, pe_ref, ei_ref, ew_ref, wp_ref, g_ref, b_ref,
                          wl_ref, bl_ref, out_ref, *, rows, ent, n_edges_blk):
    x = x_ref[...]                                # (R, Din)
    pe = pe_ref[...]                              # (R, 1) int32

    # ---- Stage 1: entity-gathered projection as a single K-packed MXU matmul ----
    # x_sel[r, j*Din + d] = x[r, d] * (pe[r] == j)  =>  x_sel @ W_packed == x @ W[pe]
    x_sel = jnp.concatenate(
        [jnp.where(pe == j, x, 0.0) for j in range(ent)], axis=1)         # (R, ENT*Din)
    h = jnp.dot(x_sel, wp_ref[...], preferred_element_type=jnp.float32)   # (R, U)

    # LayerNorm (f32) + ReLU ; dropout = identity (eval mode)
    mu = jnp.mean(h, axis=-1, keepdims=True)
    var = jnp.mean((h - mu) ** 2, axis=-1, keepdims=True)
    h = (h - mu) * jax.lax.rsqrt(var + LN_EPS)
    h = jnp.maximum(h * g_ref[...] + b_ref[...], 0.0)

    # ---- Stage 2: GCN linear with BatchNorm(eval) pre-folded into (W', b') ----
    h = jnp.dot(h, wl_ref[...], preferred_element_type=jnp.float32) + bl_ref[...]

    # ---- Stage 3: block-diagonal normalized-adjacency aggregation + final ReLU ----
    # Edge indices were offset by (t % TB)*N wrapper-side, so one one-hot pair
    # covers all TB timesteps; cross-timestep entries of A are structurally zero.
    ei = ei_ref[0]                                # (2, Eb) int32
    ew = ew_ref[0]                                # (1, Eb) 0.1-scaled weights
    src = ei[0:1, :]                              # (1, Eb) source j (row)
    dst = ei[1:2, :]                              # (1, Eb) target i (col)

    node_id = jax.lax.broadcasted_iota(jnp.int32, (rows, n_edges_blk), 0)
    src_oh = (node_id == src).astype(jnp.float32)               # (R, Eb)
    dst_oh = (node_id == dst).astype(jnp.float32)               # (R, Eb)

    # degree counts edges landing on each target, +1 for the added self-loop
    deg = 1.0 + jnp.sum(dst_oh, axis=1, keepdims=True)          # (R, 1)
    dinv = jax.lax.rsqrt(deg)                                   # deg >= 1
    dinv_src = jnp.sum(dinv * src_oh, axis=0, keepdims=True)    # (1, Eb) = dinv[src]
    dinv_dst = jnp.sum(dinv * dst_oh, axis=0, keepdims=True)    # (1, Eb) = dinv[dst]
    coeff = dinv_src * dinv_dst * ew                            # (1, Eb)

    # A[i, j] = sum_e coeff[e] * [dst_e == i] * [src_e == j]   (MXU, no scatter)
    a = jax.lax.dot_general(
        dst_oh * coeff, src_oh,
        dimension_numbers=(((1,), (1,)), ((), ())),
        preferred_element_type=jnp.float32)                     # (R, R) block-diag

    out = jnp.dot(a, h, preferred_element_type=jnp.float32)
    out = out + (dinv * dinv) * h          # self-loop term: fill weight 1, coeff 1/deg
    out_ref[...] = jnp.maximum(out, 0.0)


# ----------------------------------------------------------------------------
# Wrapper
# ----------------------------------------------------------------------------
def spatial_layer_forward(node_state, edge_index, point_enc, edge_weight, params,
                          *, t_block=4):
    T, N, Din = node_state.shape
    ENT, _, U = params["point_enc_w"].shape
    E = edge_index.shape[-1]

    t_block = min(t_block, T)
    while T % t_block:                 # keep blocks even; grid stays >= 2 for T >= 2*TB
        t_block -= 1
    grid = T // t_block
    rows_blk = t_block * N
    e_blk = t_block * E

    # ---- cheap wrapper-side prep (reshapes / elementwise folds only) ----
    x2d = node_state.reshape(T * N, Din).astype(jnp.float32)
    pe2d = point_enc.astype(jnp.int32).reshape(T * N, 1)

    # offset edges into the block-folded row space, pack TB timesteps of edges
    offs = (jnp.arange(T, dtype=jnp.int32) % t_block) * N                   # (T,)
    ei_off = edge_index.astype(jnp.int32) + offs[:, None, None]             # (T, 2, E)
    ei_blk = (ei_off.reshape(grid, t_block, 2, E)
              .transpose(0, 2, 1, 3).reshape(grid, 2, e_blk))               # (G, 2, TB*E)
    ew_blk = (params["edge_enc_bipartite"].reshape(()) * edge_weight
              ).reshape(grid, 1, e_blk)                                     # (G, 1, TB*E)

    w_packed = params["point_enc_w"].reshape(ENT * Din, U)

    bn_scale = params["bn_gamma"] / jnp.sqrt(params["bn_var"] + BN_EPS)     # (U,)
    bn_shift = params["bn_beta"] - params["bn_mean"] * bn_scale
    w_lin = params["lin_w_t"] * bn_scale[None, :]                           # (U, U)
    b_lin = (params["lin_b"] * bn_scale + bn_shift).reshape(1, U)

    out2d = pl.pallas_call(
        partial(_spatial_fused_kernel, rows=rows_blk, ent=ENT, n_edges_blk=e_blk),
        out_shape=jax.ShapeDtypeStruct((T * N, U), jnp.float32),
        grid_spec=pltpu.PrefetchScalarGridSpec(
            num_scalar_prefetch=0,
            grid=(grid,),
            in_specs=[
                pl.BlockSpec((rows_blk, Din), lambda g: (g, 0)),
                pl.BlockSpec((rows_blk, 1), lambda g: (g, 0)),
                pl.BlockSpec((1, 2, e_blk), lambda g: (g, 0, 0)),
                pl.BlockSpec((1, 1, e_blk), lambda g: (g, 0, 0)),
                pl.BlockSpec((ENT * Din, U), lambda g: (0, 0)),
                pl.BlockSpec((1, U), lambda g: (0, 0)),
                pl.BlockSpec((1, U), lambda g: (0, 0)),
                pl.BlockSpec((U, U), lambda g: (0, 0)),
                pl.BlockSpec((1, U), lambda g: (0, 0)),
            ],
            out_specs=pl.BlockSpec((rows_blk, U), lambda g: (g, 0)),
        ),
        compiler_params=pltpu.CompilerParams(dimension_semantics=("parallel",)),
    )(x2d, pe2d, ei_blk, ew_blk,
      w_packed, params["ln_gamma"], params["ln_beta"], w_lin, b_lin)

    return out2d.reshape(T, N, U)


# ----------------------------------------------------------------------------
# Pure-JAX reference (same math, no Pallas) for a sanity check
# ----------------------------------------------------------------------------
def _build_adjacency(edge_index, edge_weight, n_nodes, edge_enc_bipartite):
    def per_t(ei, ew):
        row, col = ei[0], ei[1]
        ew = (edge_enc_bipartite * ew).reshape(-1)
        loop = jnp.arange(n_nodes, dtype=row.dtype)
        row = jnp.concatenate([row, loop])
        col = jnp.concatenate([col, loop])
        ew = jnp.concatenate([ew, jnp.ones((n_nodes,), ew.dtype)])   # self-loop fill = 1.0
        deg = jnp.zeros((n_nodes,), ew.dtype).at[col].add(1.0)
        dinv = jax.lax.rsqrt(deg)                                    # deg >= 1 (self-loops)
        coeff = dinv[row] * dinv[col] * ew
        return jnp.zeros((n_nodes, n_nodes), ew.dtype).at[col, row].add(coeff)

    return jax.vmap(per_t)(edge_index, edge_weight)


def _reference(node_state, edge_index, point_enc, edge_weight, params):
    W = params["point_enc_w"][point_enc]                              # (T, N, Din, U)
    x = jnp.einsum("tnd,tndu->tnu", node_state, W,
                   precision=jax.lax.Precision.HIGHEST)
    mean = x.mean(-1, keepdims=True)
    var = ((x - mean) ** 2).mean(-1, keepdims=True)
    x = (x - mean) * jax.lax.rsqrt(var + LN_EPS) * params["ln_gamma"] + params["ln_beta"]
    x = jnp.maximum(x, 0.0)

    A = _build_adjacency(edge_index, edge_weight, x.shape[1], params["edge_enc_bipartite"])
    bn_scale = params["bn_gamma"] / jnp.sqrt(params["bn_var"] + BN_EPS)
    bn_shift = params["bn_beta"] - params["bn_mean"] * bn_scale
    h = jnp.einsum("tnu,uv->tnv", x, params["lin_w_t"],
                   precision=jax.lax.Precision.HIGHEST) + params["lin_b"]
    h = h * bn_scale + bn_shift
    out = jnp.einsum("tnm,tmu->tnu", A, h, precision=jax.lax.Precision.HIGHEST)
    return jnp.maximum(out, 0.0)


# ----------------------------------------------------------------------------
if __name__ == "__main__":
    # small shapes: T=8 timesteps (TB=4 per grid step -> grid of 2), N=8 nodes,
    # Din=32 input_units, U=32 units, entities=4 (K-pack = 4*32 = 128), E=16 edges
    T, N, Din, U, ENT, E = 8, 8, 32, 32, 4, 16

    key = jax.random.PRNGKey(0)
    k = jax.random.split(key, 8)

    # deterministic parameter init (kaiming-style scaling; synthetic, not a checkpoint)
    params = {
        "point_enc_w": jax.random.normal(k[0], (ENT, Din, U), jnp.float32)
                       * jnp.sqrt(2.0 / Din),
        "ln_gamma": jnp.ones((1, U), jnp.float32),
        "ln_beta": jnp.zeros((1, U), jnp.float32),
        "edge_enc_bipartite": jnp.full((1, 1), 0.1, jnp.float32),
        # nn.Linear(units, units): y = x @ W.T + b ; store W.T directly
        "lin_w_t": (jax.random.normal(k[1], (U, U), jnp.float32)
                    * jnp.sqrt(2.0 / U)).T,
        "lin_b": jnp.zeros((1, U), jnp.float32),
        # BatchNorm1d(units) eval-mode state (defaults)
        "bn_gamma": jnp.ones((U,), jnp.float32),
        "bn_beta": jnp.zeros((U,), jnp.float32),
        "bn_mean": jnp.zeros((U,), jnp.float32),
        "bn_var": jnp.ones((U,), jnp.float32),
    }

    node_state = jax.random.normal(k[2], (T, N, Din), jnp.float32)
    point_enc = jax.random.randint(k[3], (T, N), 0, ENT, jnp.int32)
    edge_index = jax.random.randint(k[4], (T, 2, E), 0, N, jnp.int32)
    edge_weight = jax.random.uniform(k[5], (T, E), jnp.float32, 0.5, 1.5)

    # TODO(synk): need_grad=True branch (edge_grad_storage / learning_weight) and the
    # unused fc_f layer are not translated; eval-mode dropout layers are identity.
    out = spatial_layer_forward(node_state, edge_index, point_enc, edge_weight,
                                params, t_block=4)
    out = jax.block_until_ready(out)

    ref = jax.block_until_ready(
        _reference(node_state, edge_index, point_enc, edge_weight, params))

    assert out.shape == (T, N, U)
    assert bool(jnp.all(jnp.isfinite(out)))
    np.testing.assert_allclose(np.asarray(out), np.asarray(ref), rtol=5e-2, atol=5e-2)

    print("KERNEL_OK")
</pallas_src>

<mosaic_0001>
module attributes {stable_mosaic.version = 11 : i64} {
  func.func @_spatial_fused_kernel(%arg0: i32, %arg1: memref<32x32xf32, #tpu.memory_space<vmem>>, %arg2: memref<32x1xi32, #tpu.memory_space<vmem>>, %arg3: memref<1x2x64xi32, #tpu.memory_space<vmem>>, %arg4: memref<1x1x64xf32, #tpu.memory_space<vmem>>, %arg5: memref<128x32xf32, #tpu.memory_space<vmem>>, %arg6: memref<1x32xf32, #tpu.memory_space<vmem>>, %arg7: memref<1x32xf32, #tpu.memory_space<vmem>>, %arg8: memref<32x32xf32, #tpu.memory_space<vmem>>, %arg9: memref<1x32xf32, #tpu.memory_space<vmem>>, %arg10: memref<32x32xf32, #tpu.memory_space<vmem>>) attributes {dimension_semantics = [#tpu.dimension_semantics<parallel>], iteration_bounds = array<i64: 2>, scalar_prefetch = 0 : i64, scratch_operands = 0 : i64, tpu.core_type = #tpu.core_type<tc>, window_params = [{transform_indices = @transform_0, window_bounds = array<i64: 32, 32>}, {transform_indices = @transform_1, window_bounds = array<i64: 32, 1>}, {transform_indices = @transform_2, window_bounds = array<i64: 1, 2, 64>}, {transform_indices = @transform_3, window_bounds = array<i64: 1, 1, 64>}, {pipeline_mode = #tpu.pipeline_mode<synchronous>, transform_indices = @transform_4, window_bounds = array<i64: 128, 32>}, {pipeline_mode = #tpu.pipeline_mode<synchronous>, transform_indices = @transform_5, window_bounds = array<i64: 1, 32>}, {pipeline_mode = #tpu.pipeline_mode<synchronous>, transform_indices = @transform_6, window_bounds = array<i64: 1, 32>}, {pipeline_mode = #tpu.pipeline_mode<synchronous>, transform_indices = @transform_7, window_bounds = array<i64: 32, 32>}, {pipeline_mode = #tpu.pipeline_mode<synchronous>, transform_indices = @transform_8, window_bounds = array<i64: 1, 32>}, {transform_indices = @transform_9, window_bounds = array<i64: 32, 32>}]} {
    %c0 = arith.constant 0 : index
    %c0_0 = arith.constant 0 : index
    %0 = vector.load %arg1[%c0, %c0_0] : memref<32x32xf32, #tpu.memory_space<vmem>>, vector<32x32xf32>
    %c0_1 = arith.constant 0 : index
    %c0_2 = arith.constant 0 : index
    %1 = vector.load %arg2[%c0_1, %c0_2] : memref<32x1xi32, #tpu.memory_space<vmem>>, vector<32x1xi32>
    %c0_i32 = arith.constant 0 : i32
    %2 = vector.broadcast %c0_i32 : i32 to vector<32x1xi32>
    %3 = arith.cmpi eq, %1, %2 : vector<32x1xi32>
    %cst = arith.constant 0.000000e+00 : f32
    %4 = vector.shape_cast %3 : vector<32x1xi1> to vector<32x1xi1>
    %5 = vector.broadcast %4 : vector<32x1xi1> to vector<32x32xi1>
    %6 = vector.broadcast %cst : f32 to vector<32x32xf32>
    %7 = arith.select %5, %0, %6 : vector<32x32xi1>, vector<32x32xf32>
    %c1_i32 = arith.constant 1 : i32
    %8 = vector.broadcast %c1_i32 : i32 to vector<32x1xi32>
    %9 = arith.cmpi eq, %1, %8 : vector<32x1xi32>
    %cst_3 = arith.constant 0.000000e+00 : f32
    %10 = vector.shape_cast %9 : vector<32x1xi1> to vector<32x1xi1>
    %11 = vector.broadcast %10 : vector<32x1xi1> to vector<32x32xi1>
    %12 = vector.broadcast %cst_3 : f32 to vector<32x32xf32>
    %13 = arith.select %11, %0, %12 : vector<32x32xi1>, vector<32x32xf32>
    %c2_i32 = arith.constant 2 : i32
    %14 = vector.broadcast %c2_i32 : i32 to vector<32x1xi32>
    %15 = arith.cmpi eq, %1, %14 : vector<32x1xi32>
    %cst_4 = arith.constant 0.000000e+00 : f32
    %16 = vector.shape_cast %15 : vector<32x1xi1> to vector<32x1xi1>
    %17 = vector.broadcast %16 : vector<32x1xi1> to vector<32x32xi1>
    %18 = vector.broadcast %cst_4 : f32 to vector<32x32xf32>
    %19 = arith.select %17, %0, %18 : vector<32x32xi1>, vector<32x32xf32>
    %c3_i32 = arith.constant 3 : i32
    %20 = vector.broadcast %c3_i32 : i32 to vector<32x1xi32>
    %21 = arith.cmpi eq, %1, %20 : vector<32x1xi32>
    %cst_5 = arith.constant 0.000000e+00 : f32
    %22 = vector.shape_cast %21 : vector<32x1xi1> to vector<32x1xi1>
    %23 = vector.broadcast %22 : vector<32x1xi1> to vector<32x32xi1>
    %24 = vector.broadcast %cst_5 : f32 to vector<32x32xf32>
    %25 = arith.select %23, %0, %24 : vector<32x32xi1>, vector<32x32xf32>
    %26 = tpu.concatenate %7, %13, %19, %25 in 1 : vector<32x32xf32>, vector<32x32xf32>, vector<32x32xf32>, vector<32x32xf32> -> vector<32x128xf32>
    %c0_6 = arith.constant 0 : index
    %c0_7 = arith.constant 0 : index
    %27 = vector.load %arg5[%c0_6, %c0_7] : memref<128x32xf32, #tpu.memory_space<vmem>>, vector<128x32xf32>
    %cst_8 = arith.constant dense<0.000000e+00> : vector<32x32xf32>
    %28 = tpu.matmul %26, %27, %cst_8 {dimension_numbers = #tpu.dot_dimension_numbers<[1], [0], [0], [1], [0, 0, 1, 1], [], []>} : vector<32x128xf32>, vector<128x32xf32>, vector<32x32xf32> -> vector<32x32xf32>
    %cst_9 = arith.constant dense<0.000000e+00> : vector<32xf32>
    %29 = vector.multi_reduction <add>, %28, %cst_9 [1] : vector<32x32xf32> to vector<32xf32>
    %30 = vector.shape_cast %29 : vector<32xf32> to vector<32x1xf32>
    %cst_10 = arith.constant 3.200000e+01 : f32
    %31 = vector.broadcast %cst_10 : f32 to vector<32x1xf32>
    %32 = arith.divf %30, %31 : vector<32x1xf32>
    %33 = vector.broadcast %32 : vector<32x1xf32> to vector<32x32xf32>
    %34 = arith.subf %28, %33 : vector<32x32xf32>
    %35 = arith.mulf %34, %34 : vector<32x32xf32>
    %cst_11 = arith.constant dense<0.000000e+00> : vector<32xf32>
    %36 = vector.multi_reduction <add>, %35, %cst_11 [1] : vector<32x32xf32> to vector<32xf32>
    %37 = vector.shape_cast %36 : vector<32xf32> to vector<32x1xf32>
    %cst_12 = arith.constant 3.200000e+01 : f32
    %38 = vector.broadcast %cst_12 : f32 to vector<32x1xf32>
    %39 = arith.divf %37, %38 : vector<32x1xf32>
    %40 = vector.broadcast %32 : vector<32x1xf32> to vector<32x32xf32>
    %41 = arith.subf %28, %40 : vector<32x32xf32>
    %cst_13 = arith.constant 9.99999974E-6 : f32
    %42 = vector.broadcast %cst_13 : f32 to vector<32x1xf32>
    %43 = arith.addf %39, %42 : vector<32x1xf32>
    %44 = math.rsqrt %43 : vector<32x1xf32>
    %45 = vector.broadcast %44 : vector<32x1xf32> to vector<32x32xf32>
    %46 = arith.mulf %41, %45 : vector<32x32xf32>
    %c0_14 = arith.constant 0 : index
    %c0_15 = arith.constant 0 : index
    %47 = vector.load %arg6[%c0_14, %c0_15] : memref<1x32xf32, #tpu.memory_space<vmem>>, vector<1x32xf32>
    %48 = vector.broadcast %47 : vector<1x32xf32> to vector<32x32xf32>
    %49 = arith.mulf %46, %48 : vector<32x32xf32>
    %c0_16 = arith.constant 0 : index
    %c0_17 = arith.constant 0 : index
    %50 = vector.load %arg7[%c0_16, %c0_17] : memref<1x32xf32, #tpu.memory_space<vmem>>, vector<1x32xf32>
    %51 = vector.broadcast %50 : vector<1x32xf32> to vector<32x32xf32>
    %52 = arith.addf %49, %51 : vector<32x32xf32>
    %cst_18 = arith.constant 0.000000e+00 : f32
    %53 = vector.broadcast %cst_18 : f32 to vector<32x32xf32>
    %54 = arith.maximumf %52, %53 : vector<32x32xf32>
    %c0_19 = arith.constant 0 : index
    %c0_20 = arith.constant 0 : index
    %55 = vector.load %arg8[%c0_19, %c0_20] : memref<32x32xf32, #tpu.memory_space<vmem>>, vector<32x32xf32>
    %cst_21 = arith.constant dense<0.000000e+00> : vector<32x32xf32>
    %56 = tpu.matmul %54, %55, %cst_21 {dimension_numbers = #tpu.dot_dimension_numbers<[1], [0], [0], [1], [0, 0, 1, 1], [], []>} : vector<32x32xf32>, vector<32x32xf32>, vector<32x32xf32> -> vector<32x32xf32>
    %c0_22 = arith.constant 0 : index
    %c0_23 = arith.constant 0 : index
    %57 = vector.load %arg9[%c0_22, %c0_23] : memref<1x32xf32, #tpu.memory_space<vmem>>, vector<1x32xf32>
    %58 = vector.broadcast %57 : vector<1x32xf32> to vector<32x32xf32>
    %59 = arith.addf %56, %58 : vector<32x32xf32>
    %c0_24 = arith.constant 0 : index
    %c0_25 = arith.constant 0 : index
    %c0_26 = arith.constant 0 : index
    %60 = vector.load %arg3[%c0_24, %c0_25, %c0_26] : memref<1x2x64xi32, #tpu.memory_space<vmem>>, vector<1x2x64xi32>
    %61 = vector.shape_cast %60 : vector<1x2x64xi32> to vector<2x64xi32>
    %c0_27 = arith.constant 0 : index
    %c0_28 = arith.constant 0 : index
    %c0_29 = arith.constant 0 : index
    %62 = vector.load %arg4[%c0_27, %c0_28, %c0_29] : memref<1x1x64xf32, #tpu.memory_space<vmem>>, vector<1x1x64xf32>
    %63 = vector.shape_cast %62 : vector<1x1x64xf32> to vector<1x64xf32>
    %64 = vector.extract_strided_slice %61 {offsets = [0, 0], sizes = [1, 64], strides = [1, 1]} : vector<2x64xi32> to vector<1x64xi32>
    %65 = vector.extract_strided_slice %61 {offsets = [1, 0], sizes = [1, 64], strides = [1, 1]} : vector<2x64xi32> to vector<1x64xi32>
    %66 = tpu.iota {dimensions = array<i32: 0>} : vector<32x64xi32>
    %67 = vector.broadcast %64 : vector<1x64xi32> to vector<32x64xi32>
    %68 = arith.cmpi eq, %66, %67 : vector<32x64xi32>
    %69 = arith.extui %68 : vector<32x64xi1> to vector<32x64xi32>
    %70 = arith.sitofp %69 : vector<32x64xi32> to vector<32x64xf32>
    %71 = vector.broadcast %65 : vector<1x64xi32> to vector<32x64xi32>
    %72 = arith.cmpi eq, %66, %71 : vector<32x64xi32>
    %73 = arith.extui %72 : vector<32x64xi1> to vector<32x64xi32>
    %74 = arith.sitofp %73 : vector<32x64xi32> to vector<32x64xf32>
    %cst_30 = arith.constant dense<0.000000e+00> : vector<32xf32>
    %75 = vector.multi_reduction <add>, %74, %cst_30 [1] : vector<32x64xf32> to vector<32xf32>
    %76 = vector.shape_cast %75 : vector<32xf32> to vector<32x1xf32>
    %cst_31 = arith.constant 1.000000e+00 : f32
    %77 = vector.broadcast %cst_31 : f32 to vector<32x1xf32>
    %78 = arith.addf %77, %76 : vector<32x1xf32>
    %79 = math.rsqrt %78 : vector<32x1xf32>
    %80 = vector.broadcast %79 : vector<32x1xf32> to vector<32x64xf32>
    %81 = arith.mulf %80, %70 : vector<32x64xf32>
    %cst_32 = arith.constant dense<0.000000e+00> : vector<64xf32>
    %82 = vector.multi_reduction <add>, %81, %cst_32 [0] : vector<32x64xf32> to vector<64xf32>
    %83 = vector.shape_cast %82 : vector<64xf32> to vector<1x64xf32>
    %84 = vector.broadcast %79 : vector<32x1xf32> to vector<32x64xf32>
    %85 = arith.mulf %84, %74 : vector<32x64xf32>
    %cst_33 = arith.constant dense<0.000000e+00> : vector<64xf32>
    %86 = vector.multi_reduction <add>, %85, %cst_33 [0] : vector<32x64xf32> to vector<64xf32>
    %87 = vector.shape_cast %86 : vector<64xf32> to vector<1x64xf32>
    %88 = arith.mulf %83, %87 : vector<1x64xf32>
    %89 = arith.mulf %88, %63 : vector<1x64xf32>
    %90 = vector.broadcast %89 : vector<1x64xf32> to vector<32x64xf32>
    %91 = arith.mulf %74, %90 : vector<32x64xf32>
    %cst_34 = arith.constant dense<0.000000e+00> : vector<32x32xf32>
    %92 = tpu.matmul %91, %70, %cst_34 {dimension_numbers = #tpu.dot_dimension_numbers<[1], [1], [0], [0], [0, 0, 1, 0], [], []>} : vector<32x64xf32>, vector<32x64xf32>, vector<32x32xf32> -> vector<32x32xf32>
    %cst_35 = arith.constant dense<0.000000e+00> : vector<32x32xf32>
    %93 = tpu.matmul %92, %59, %cst_35 {dimension_numbers = #tpu.dot_dimension_numbers<[1], [0], [0], [1], [0, 0, 1, 1], [], []>} : vector<32x32xf32>, vector<32x32xf32>, vector<32x32xf32> -> vector<32x32xf32>
    %94 = arith.mulf %79, %79 : vector<32x1xf32>
    %95 = vector.broadcast %94 : vector<32x1xf32> to vector<32x32xf32>
    %96 = arith.mulf %95, %59 : vector<32x32xf32>
    %97 = arith.addf %93, %96 : vector<32x32xf32>
    %cst_36 = arith.constant 0.000000e+00 : f32
    %98 = vector.broadcast %cst_36 : f32 to vector<32x32xf32>
    %99 = arith.maximumf %97, %98 : vector<32x32xf32>
    %c0_37 = arith.constant 0 : index
    %c0_38 = arith.constant 0 : index
    %100 = vector.load %arg10[%c0_37, %c0_38] : memref<32x32xf32, #tpu.memory_space<vmem>>, vector<32x32xf32>
    tpu.vector_store %arg10[%c0_37, %c0_38], %99 {strides = array<i32>} : memref<32x32xf32, #tpu.memory_space<vmem>>, vector<32x32xf32>,
    return
  }
  func.func @transform_0(%arg0: i32) -> (i32, i32) {
    %c0_i32 = arith.constant 0 : i32
    %c0_i32_0 = arith.constant 0 : i32
    return %arg0, %c0_i32 : i32, i32
  }
  func.func @transform_1(%arg0: i32) -> (i32, i32) {
    %c0_i32 = arith.constant 0 : i32
    %c0_i32_0 = arith.constant 0 : i32
    return %arg0, %c0_i32 : i32, i32
  }
  func.func @transform_2(%arg0: i32) -> (i32, i32, i32) {
    %c0_i32 = arith.constant 0 : i32
    %c0_i32_0 = arith.constant 0 : i32
    %c0_i32_1 = arith.constant 0 : i32
    return %arg0, %c0_i32, %c0_i32_0 : i32, i32, i32
  }
  func.func @transform_3(%arg0: i32) -> (i32, i32, i32) {
    %c0_i32 = arith.constant 0 : i32
    %c0_i32_0 = arith.constant 0 : i32
    %c0_i32_1 = arith.constant 0 : i32
    return %arg0, %c0_i32, %c0_i32_0 : i32, i32, i32
  }
  func.func @transform_4(%arg0: i32) -> (i32, i32) {
    %c0_i32 = arith.constant 0 : i32
    %c0_i32_0 = arith.constant 0 : i32
    %c0_i32_1 = arith.constant 0 : i32
    return %c0_i32, %c0_i32_0 : i32, i32
  }
  func.func @transform_5(%arg0: i32) -> (i32, i32) {
    %c0_i32 = arith.constant 0 : i32
    %c0_i32_0 = arith.constant 0 : i32
    %c0_i32_1 = arith.constant 0 : i32
    return %c0_i32, %c0_i32_0 : i32, i32
  }
  func.func @transform_6(%arg0: i32) -> (i32, i32) {
    %c0_i32 = arith.constant 0 : i32
    %c0_i32_0 = arith.constant 0 : i32
    %c0_i32_1 = arith.constant 0 : i32
    return %c0_i32, %c0_i32_0 : i32, i32
  }
  func.func @transform_7(%arg0: i32) -> (i32, i32) {
    %c0_i32 = arith.constant 0 : i32
    %c0_i32_0 = arith.constant 0 : i32
    %c0_i32_1 = arith.constant 0 : i32
    return %c0_i32, %c0_i32_0 : i32, i32
  }
  func.func @transform_8(%arg0: i32) -> (i32, i32) {
    %c0_i32 = arith.constant 0 : i32
    %c0_i32_0 = arith.constant 0 : i32
    %c0_i32_1 = arith.constant 0 : i32
    return %c0_i32, %c0_i32_0 : i32, i32
  }
  func.func @transform_9(%arg0: i32) -> (i32, i32) {
    %c0_i32 = arith.constant 0 : i32
    %c0_i32_0 = arith.constant 0 : i32
    return %arg0, %c0_i32 : i32, i32
  }
}

</mosaic_0001>

<bundles_post_ra>
// kernel: tpu_custom_call.1
= control target key start
LH: loop header
LB: loop body
LE: loop exit
PB: predicated region body
PF: predicated region fallthrough
CT: control target
= control target key end

     0   :  { %s1623_s30 = smov 0   ;;  %s1909_s0 = inlined_call_operand.vmem [shape: f32[64,32], index: 0, kind: input, shape index: {}]   ;;  %s1910_s1 = inlined_call_operand.vmem [shape: s32[64,1], index: 1, kind: input, shape index: {}]   ;;  %s1911_s2 = inlined_call_operand.vmem [shape: s32[2,2,64], index: 2, kind: input, shape index: {}]   ;;  %s1912_s3 = inlined_call_operand.vmem [shape: f32[2,1,64], index: 3, kind: input, shape index: {}]   ;;  %s1913_s4 = inlined_call_operand.vmem [shape: f32[128,32], index: 4, kind: input, shape index: {}]   ;;  %s1914_s5 = inlined_call_operand.vmem [shape: f32[1,32], index: 5, kind: input, shape index: {}]   ;;  %s1915_s6 = inlined_call_operand.vmem [shape: f32[1,32], index: 6, kind: input, shape index: {}]   ;;  %s1916_s7 = inlined_call_operand.vmem [shape: f32[32,32], index: 7, kind: input, shape index: {}]   ;;  %s1917_s8 = inlined_call_operand.vmem [shape: f32[1,32], index: 8, kind: input, shape index: {}]   ;;  %s1918_s9 = inlined_call_operand.vmem [shape: f32[64,32], index: 9, kind: output, shape index: {}]  }
   0x1 LB: > { %s1629_s10 = sadd.s32 4294967295, %s1566_s30   ;;  %p1278_p0 = scmp.ge.s32.totalorder %s1566_s30, 1  ;;  %s1566_s30 = sphi %s1623_s30, %s19_s30  }
   0x2   : > { %p316_p1 = scmp.lt.s32.totalorder %s1566_s30, 3 }
   0x4   : > { %p317_p2 = pnand %p1278_p0, %p316_p1 }
   0x5   : > { %s1279_s11 = sshll.u32 (!%p317_p2), %s1629_s10, 2  ;;  %v1568_v0 = vmov (!%p317_p2), 0   ;;  %v572_v21 = vld [vmem:[%s1913_s4] sm:$0xff] (!%p317_p2)  ;;  %v573_v22 = vld [vmem:[%s1913_s4 + $0x8] sm:$0xff] (!%p317_p2)  ;;  %v574_v23 = vld [vmem:[%s1913_s4 + $0x10] sm:$0xff] (!%p317_p2)  ;;  %s1570_s16 = smov (!%p317_p2), 32  }
   0x6   : > { %320 = sbr.rel (%p317_p2) target bundleno = 1265 (0x4f1), region = 56  ;;  %1513 = vset.pattern.permute.xlu1 (!%p317_p2), %v1568_v0  ;;  %1512 = vset.pattern.permute.xlu0 (!%p317_p2), %v1568_v0  ;;  %p365_p3 = scmp.lt.s32.totalorder (!%p317_p2), %s1279_s11, 7  ;;  %v1439_v24 = vpack.c.bf16 (!%p317_p2), %v573_v22, %v572_v21  ;;  %v575_v25 = vld [vmem:[%s1913_s4 + $0x18] sm:$0xff] (!%p317_p2)  ;;  %v576_v27 = vld [vmem:[%s1913_s4 + $0x20] sm:$0xff] (!%p317_p2)  ;;  %v577_v28 = vld [vmem:[%s1913_s4 + $0x28] sm:$0xff] (!%p317_p2) }
   0x7   : > { %v1443_v26 = vpack.c.bf16 (!%p317_p2), %v575_v25, %v574_v23  ;;  %v1447_v29 = vpack.c.bf16 (!%p317_p2), %v577_v28, %v576_v27  ;;  %v578_v30 = vld [vmem:[%s1913_s4 + $0x30] sm:$0xff] (!%p317_p2)  ;;  %v579_v31 = vld [vmem:[%s1913_s4 + $0x38] sm:$0xff] (!%p317_p2)  ;;  %v580_v33 = vld [vmem:[%s1913_s4 + $0x40] sm:$0xff] (!%p317_p2)  ;;  %s1571_s17 = smov (!%p317_p2), 96   ;;  %p376_p4 = scmp.lt.s32.totalorder (!%p317_p2), %s1629_s10, 1 }
   0x8   : > { %1440 = vmatprep.subr.bf16.mxu0 (!%p317_p2), %v1439_v24  ;;  %v1451_v32 = vpack.c.bf16 (!%p317_p2), %v579_v31, %v578_v30  ;;  %v581_v34 = vld [vmem:[%s1913_s4 + $0x48] sm:$0xff] (!%p317_p2)  ;;  %v582_v36 = vld [vmem:[%s1913_s4 + $0x50] sm:$0xff] (!%p317_p2)  ;;  %v583_v37 = vld [vmem:[%s1913_s4 + $0x58] sm:$0xff] (!%p317_p2) }
   0x9   : > { %1442 = vmatpush3.bf16.msra.mxu0 (!%p317_p2), %v1439_v24  ;;  %v1455_v35 = vpack.c.bf16 (!%p317_p2), %v581_v34, %v580_v33  ;;  %v1459_v38 = vpack.c.bf16 (!%p317_p2), %v583_v37, %v582_v36  ;;  %v584_v39 = vld [vmem:[%s1913_s4 + $0x60] sm:$0xff] (!%p317_p2)  ;;  %v585_v40 = vld [vmem:[%s1913_s4 + $0x68] sm:$0xff] (!%p317_p2)  ;;  %v586_v42 = vld [vmem:[%s1913_s4 + $0x70] sm:$0xff] (!%p317_p2) }
   0xa   : > { %1444 = vmatprep.subr.bf16.mxu0 (!%p317_p2), %v1443_v26  ;;  %v1463_v41 = vpack.c.bf16 (!%p317_p2), %v585_v40, %v584_v39  ;;  %v587_v43 = vld [vmem:[%s1913_s4 + $0x78] sm:$0xff] (!%p317_p2) }
   0xb   : > { %v1467_v44 = vpack.c.bf16 (!%p317_p2), %v587_v43, %v586_v42 }
   0xd   : > { %s1922_s11 = smov (!%p365_p3, %s1279_s11), 7  ;;  %1446 = vmatpush3.bf16.msra.mxu0 %v1443_v26  ;;  %s1924_s10 = smov (!%p376_p4, %s1629_s10), 1 }
   0xe   : > { %s1634_s12 = sshll.u32 %s1922_s11, 3  ;;  %1448 = vmatprep.subr.bf16.mxu0 %v1447_v29  ;;  %s1283_s18 = sshll.u32 %s1924_s10, 1 }
   0xf   : > { %s374_s15 = scalar_lea.vmem %s1910_s1, %s1634_s12  ;;  %s368_s14 = scalar_lea.vmem %s1909_s0, %s1634_s12 }
  0x10   : > { %v393_v1 = vld [vmem:[%s374_s15] sm:$0xff]  ;;  %v394_v2 = vld [vmem:[%s374_s15 + $0x8] sm:$0xff]  ;;  %v396_v7 = vld [vmem:[%s374_s15 + $0x18] sm:$0xff]  ;;  %s379_s21 = scalar_lea.vmem %s1911_s2, %s1283_s18  ;;  %s387_s22 = scalar_lea.vmem %s1918_s9, %s1634_s12 }
  0x11   : > { %vm453_vm0 = vcmp.eq.s32.totalorder %v393_v1, 2  ;;  %vm425_vm1 = vcmp.eq.s32.totalorder %v393_v1, 1  ;;  %vm454_vm2 = vcmp.eq.s32.totalorder %v394_v2, 2  ;;  %vm426_vm3 = vcmp.eq.s32.totalorder %v394_v2, 1  ;;  %v395_v8 = vld [vmem:[%s374_s15 + $0x10] sm:$0xff]  ;;  %1450 = vmatpush3.bf16.msra.mxu0 %v1447_v29  ;;  %v1692_v47 = vld [vmem:[%s368_s14] sm:$0xff] }
  0x12   : > { %v457_v3 = vsel %vm453_vm0, 1, %v1568_v0  ;;  %v429_v4 = vsel %vm425_vm1, 1, %v1568_v0  ;;  %v458_v5 = vsel %vm454_vm2, 1, %v1568_v0  ;;  %v430_v6 = vsel %vm426_vm3, 1, %v1568_v0  ;;  %1452 = vmatprep.subr.bf16.mxu0 %v1451_v32  ;;  %v390_v48 = vld [vmem:[%s368_s14 + $0x8] sm:$0xff]  ;;  %s1569_s15 = smov 64  }
  0x13   : > { %462 = vperm.xlu1 %1513, %v457_v3   ;;  %434 = vperm.xlu0 %1512, %v429_v4   ;;  %vm482_vm4 = vcmp.eq.s32.totalorder %v394_v2, 3  ;;  %vm481_vm5 = vcmp.eq.s32.totalorder %v393_v1, 3  ;;  %vm428_vm6 = vcmp.eq.s32.totalorder %v396_v7, 1  ;;  %vm427_vm7 = vcmp.eq.s32.totalorder %v395_v8, 1  ;;  %v1697_v62 = vld [vmem:[%s368_s14 + $0x18] sm:$0xff]  ;;  %v1699_v63 = vld [vmem:[%s368_s14 + $0x10] sm:$0xff]  ;;  %s382_s14 = scalar_lea.vmem %s1912_s3, %s1924_s10 }
  0x14   : > { %v486_v9 = vsel %vm482_vm4, 1, %v1568_v0  ;;  %v485_v10 = vsel %vm481_vm5, 1, %v1568_v0  ;;  %v432_v11 = vsel %vm428_vm6, 1, %v1568_v0  ;;  %v431_v12 = vsel %vm427_vm7, 1, %v1568_v0 }
  0x15   : > { %vm456_vm8 = vcmp.eq.s32.totalorder %v396_v7, 2  ;;  %vm455_vm9 = vcmp.eq.s32.totalorder %v395_v8, 2  ;;  %vm484_vm10 = vcmp.eq.s32.totalorder %v396_v7, 3  ;;  %vm483_vm11 = vcmp.eq.s32.totalorder %v395_v8, 3  ;;  %1454 = vmatpush3.bf16.msra.mxu0 %v1451_v32 }
  0x16   : > { %v460_v13 = vsel %vm456_vm8, 1, %v1568_v0  ;;  %v459_v14 = vsel %vm455_vm9, 1, %v1568_v0  ;;  %v488_v15 = vsel %vm484_vm10, 1, %v1568_v0  ;;  %v487_v16 = vsel %vm483_vm11, 1, %v1568_v0  ;;  %1456 = vmatprep.subr.bf16.mxu0 %v1455_v35 }
  0x17   : > { %465 = vperm.xlu1 %1513, %v458_v5   ;;  %437 = vperm.xlu0 %1512, %v430_v6   ;;  %vm398_vm12 = vcmp.eq.s32.totalorder %v394_v2, 0  ;;  %vm397_vm13 = vcmp.eq.s32.totalorder %v393_v1, 0  ;;  %vm400_vm14 = vcmp.eq.s32.totalorder %v396_v7, 0  ;;  %vm399_vm15 = vcmp.eq.s32.totalorder %v395_v8, 0 }
  0x18   : > { %v402_v17 = vsel %vm398_vm12, 1, %v1568_v0  ;;  %v401_v18 = vsel %vm397_vm13, 1, %v1568_v0  ;;  %v404_v19 = vsel %vm400_vm14, 1, %v1568_v0  ;;  %v403_v20 = vsel %vm399_vm15, 1, %v1568_v0 }
  0x19   : > { %1458 = vmatpush3.bf16.msra.mxu0 %v1455_v35  ;;  %vm557_vm14 = vcmask 261120   ;;  %vm562_vm15 = vcmask 523264  }
  0x1a   : > { %1460 = vmatprep.subr.bf16.mxu0 %v1459_v38 }
  0x1b   : > { %493 = vperm.xlu1 %1513, %v486_v9   ;;  %490 = vperm.xlu0 %1512, %v485_v10  }
  0x1d   : > { %1462 = vmatpush3.bf16.msra.mxu0 %v1459_v38 }
  0x1e   : > { %1464 = vmatprep.subr.bf16.mxu0 %v1463_v41 }
  0x1f   : > { %443 = vperm.xlu1 %1513, %v432_v11   ;;  %440 = vperm.xlu0 %1512, %v431_v12  }
  0x21   : > { %1466 = vmatpush3.bf16.msra.mxu0 %v1463_v41 }
  0x22   : > { %1468 = vmatprep.subr.bf16.mxu0 %v1467_v44 }
  0x23   : > { %471 = vperm.xlu1 %1513, %v460_v13   ;;  %468 = vperm.xlu0 %1512, %v459_v14  }
  0x25   : > { %1470 = vmatpush3.bf16.msra.mxu0 %v1467_v44 }
  0x27   : > { %499 = vperm.xlu1 %1513, %v488_v15   ;;  %496 = vperm.xlu0 %1512, %v487_v16  }
  0x2b   : > { %409 = vperm.xlu1 %1513, %v402_v17   ;;  %406 = vperm.xlu0 %1512, %v401_v18  }
  0x2f   : > { %415 = vperm.xlu1 %1513, %v404_v19   ;;  %412 = vperm.xlu0 %1512, %v403_v20  }
  0x92   : > { %v463_v45 = vpop.permute.xlu1 %462  ;;  %v435_v46 = vpop.permute.xlu0 %434 }
  0x93   : > { %vm473_vm0 = vcmp.eq.s32.totalorder %v463_v45, 1  ;;  %vm445_vm1 = vcmp.eq.s32.totalorder %v435_v46, 1 }
  0x94   : > { %v477_v51 = vsel %vm473_vm0, %v1692_v47, 0.0  ;;  %v449_v52 = vsel %vm445_vm1, %v1692_v47, 0.0  ;;  %vm567_vm0 = vcmask 785408  }
  0x96   : > { %v466_v49 = vpop.permute.xlu1 %465  ;;  %v438_v50 = vpop.permute.xlu0 %437 }
  0x97   : > { %vm474_vm2 = vcmp.eq.s32.totalorder %v466_v49, 1  ;;  %vm446_vm3 = vcmp.eq.s32.totalorder %v438_v50, 1 }
  0x98   : > { %v478_v53 = vsel %vm474_vm2, %v390_v48, 0.0  ;;  %v450_v54 = vsel %vm446_vm3, %v390_v48, 0.0 }
  0x99   : > { %v1519_v55 = vpack.i.bf16 %v478_v53, %v477_v51  ;;  %v1514_v56 = vpack.i.bf16 %v450_v54, %v449_v52  ;;  %v862_v53 = vlaneseq }
  0x9a   : > { %v494_v57 = vpop.permute.xlu1 %493  ;;  %v491_v58 = vpop.permute.xlu0 %490 }
  0x9b   : > { %vm502_vm4 = vcmp.eq.s32.totalorder %v494_v57, 1  ;;  %vm501_vm5 = vcmp.eq.s32.totalorder %v491_v58, 1  ;;  %1520 = vrot.lane.b32.xlu1 %v1519_v55, %s1569_s15  ;;  %1515 = vrot.lane.b32.xlu0 %v1514_v56, %s1570_s16  ;;  %v1727_v54 = vshrl.u32 %v862_v53, 7  ;;  %v1733_v56 = vld [vmem:[%s379_s21] sm:$0x3] }
  0x9c   : > { %v506_v59 = vsel %vm502_vm4, %v390_v48, 0.0  ;;  %v505_v60 = vsel %vm501_vm5, %v1692_v47, 0.0 }
  0x9d   : > { %v1524_v61 = vpack.i.bf16 %v506_v59, %v505_v60  ;;  %v885_v55 = vsub.s32 1, %v1727_v54  ;;  %v1572_v59 = vmov 0.0  }
  0x9e   : > { %v444_v0 = vpop.permute.xlu1 %443  ;;  %v441_v1 = vpop.permute.xlu0 %440 }
  0x9f   : > { %vm448_vm6 = vcmp.eq.s32.totalorder %v444_v0, 1  ;;  %vm447_vm7 = vcmp.eq.s32.totalorder %v441_v1, 1  ;;  %1525 = vrot.lane.b32.xlu0 %v1524_v61, %s1571_s17  ;;  %v886_v57 = vrot.slane %v1733_v56, %v885_v55 }
  0xa0   : > { %v452_v2 = vsel %vm448_vm6, %v1697_v62, 0.0  ;;  %v451_v3 = vsel %vm447_vm7, %v1699_v63, 0.0 }
  0xa1   : > { %v1529_v4 = vpack.i.bf16 %v452_v2, %v451_v3  ;;  %vm887_vm3 = vcmp.eq.s32.totalorder %v1727_v54, %v886_v57  ;;  %v1745_v2 = vadd.s32 16, %v1727_v54  ;;  %v1748_v3 = vadd.s32 8, %v1727_v54 }
  0xa2   : > { %v472_v5 = vpop.permute.xlu1 %471  ;;  %v469_v6 = vpop.permute.xlu0 %468  ;;  %v1738_v60 = vsel %vm887_vm3, 1.0, %v1572_v59 }
  0xa3   : > { %vm476_vm8 = vcmp.eq.s32.totalorder %v472_v5, 1  ;;  %vm475_vm9 = vcmp.eq.s32.totalorder %v469_v6, 1  ;;  %1530 = vrot.lane.b32.xlu1 %v1529_v4, %s1570_s16  ;;  %v899_v0 = vsel %vm562_vm15, %v1738_v60, 0.0  ;;  %vm889_vm4 = vcmp.eq.s32.totalorder %v1745_v2, %v886_v57 }
  0xa4   : > { %v480_v7 = vsel %vm476_vm8, %v1697_v62, 0.0  ;;  %v479_v8 = vsel %vm475_vm9, %v1699_v63, 0.0  ;;  %vm888_vm5 = vcmp.eq.s32.totalorder %v1748_v3, %v886_v57  ;;  %v1754_v6 = vsel %vm889_vm4, 1.0, %v1572_v59 }
  0xa5   : > { %v1534_v9 = vpack.i.bf16 %v480_v7, %v479_v8  ;;  %v905_v7 = vsel %vm562_vm15, %v1754_v6, 0.0  ;;  %v866_v8 = vadd.s32 24, %v1727_v54 }
  0xa6   : > { %v500_v10 = vpop.permute.xlu1 %499  ;;  %v497_v11 = vpop.permute.xlu0 %496 }
  0xa7   : > { %vm504_vm10 = vcmp.eq.s32.totalorder %v500_v10, 1  ;;  %vm503_vm11 = vcmp.eq.s32.totalorder %v497_v11, 1  ;;  %1535 = vrot.lane.b32.xlu0 %v1534_v9, %s1569_s15  ;;  %v1760_v9 = vsel %vm888_vm5, 1.0, %v1572_v59  ;;  %vm890_vm6 = vcmp.eq.s32.totalorder %v866_v8, %v886_v57 }
  0xa8   : > { %v508_v12 = vsel %vm504_vm10, %v1697_v62, 0.0  ;;  %v507_v13 = vsel %vm503_vm11, %v1699_v63, 0.0  ;;  %v1764_v11 = vsel %vm890_vm6, 1.0, %v1572_v59  ;;  %vm1843_vm11 = vmpackc.low %vm562_vm15, %vm562_vm15 }
  0xa9   : > { %v1539_v14 = vpack.i.bf16 %v508_v12, %v507_v13  ;;  %v902_v12 = vsel %vm562_vm15, %v1760_v9, 0.0  ;;  %v908_v13 = vsel %vm562_vm15, %v1764_v11, 0.0 }
  0xaa   : > { %v410_v15 = vpop.permute.xlu1 %409  ;;  %v407_v16 = vpop.permute.xlu0 %406 }
  0xab   : > { %1540 = vrot.lane.b32.xlu1 %v1539_v14, %s1571_s17  ;;  %vm418_vm12 = vcmp.eq.s32.totalorder %v410_v15, 1  ;;  %vm417_vm13 = vcmp.eq.s32.totalorder %v407_v16, 1 }
  0xac   : > { %v422_v23 = vsel %vm418_vm12, %v390_v48, 0.0  ;;  %v421_v24 = vsel %vm417_vm13, %v1692_v47, 0.0 }
  0xae   : > { %v416_v17 = vpop.permute.xlu1 %415  ;;  %v413_v18 = vpop.permute.xlu0 %412 }
  0xaf   : > { %vm420_vm1 = vcmp.eq.s32.totalorder %v416_v17, 1  ;;  %vm419_vm2 = vcmp.eq.s32.totalorder %v413_v18, 1 }
  0xb0   : > { %v424_v42 = vsel %vm420_vm1, %v1697_v62, 0.0  ;;  %v423_v43 = vsel %vm419_vm2, %v1699_v63, 0.0 }
 0x10d   : > { %v1521_v19 = vpop.permute.xlu1 %1520  ;;  %v1516_v20 = vpop.permute.xlu0 %1515 }
 0x10e   : > { %v1518_v21 = vunpack.i.h.bf16 %v1516_v20  ;;  %v1517_v22 = vunpack.i.l.bf16 %v1516_v20  ;;  %v1523_v25 = vunpack.i.h.bf16 %v1521_v19  ;;  %v1522_v26 = vunpack.i.l.bf16 %v1521_v19 }
 0x110   : > { %v558_v27 = vsel %vm557_vm14, %v421_v24, %v1517_v22  ;;  %v559_v28 = vsel %vm557_vm14, %v422_v23, %v1518_v21 }
 0x111   : > { %v1526_v29 = vpop.permute.xlu0 %1525  ;;  %v563_v32 = vsel %vm562_vm15, %v558_v27, %v1522_v26  ;;  %v564_v33 = vsel %vm562_vm15, %v559_v28, %v1523_v25 }
 0x112   : > { %v1528_v30 = vunpack.i.h.bf16 %v1526_v29  ;;  %v1527_v31 = vunpack.i.l.bf16 %v1526_v29 }
 0x114   : > { %v568_v34 = vsel %vm567_vm0, %v563_v32, %v1527_v31  ;;  %v569_v35 = vsel %vm567_vm0, %v564_v33, %v1528_v30 }
 0x115   : > { %1391 = vmatprep.mubr.f32.mxu0 %v568_v34  ;;  %v1531_v36 = vpop.permute.xlu1 %1530  ;;  %v869_v34 = vsub.s32 0, %v1727_v54 }
 0x116   : > { %1392 = vmatmul.mubr.f32.vlgmr.msra.gmra.mrb[0].mxu0 %v569_v35  ;;  %v1533_v38 = vunpack.i.h.bf16 %v1531_v36  ;;  %v1532_v39 = vunpack.i.l.bf16 %v1531_v36 }
 0x118   : > { %v560_v47 = vsel %vm557_vm14, %v423_v43, %v1532_v39  ;;  %v561_v48 = vsel %vm557_vm14, %v424_v42, %v1533_v38  ;;  %v870_v42 = vrot.slane %v1733_v56, %v869_v34 }
 0x119   : > { %v1536_v37 = vpop.permute.xlu0 %1535 }
 0x11a   : > { %v1538_v40 = vunpack.i.h.bf16 %v1536_v37  ;;  %v1537_v41 = vunpack.i.l.bf16 %v1536_v37  ;;  %vm873_vm7 = vcmp.eq.s32.totalorder %v1745_v2, %v870_v42  ;;  %vm871_vm8 = vcmp.eq.s32.totalorder %v1727_v54, %v870_v42 }
 0x11b   : > { %vm872_vm9 = vcmp.eq.s32.totalorder %v1748_v3, %v870_v42  ;;  %vm874_vm10 = vcmp.eq.s32.totalorder %v866_v8, %v870_v42 }
 0x11c   : > { %v565_v49 = vsel %vm562_vm15, %v560_v47, %v1537_v41  ;;  %v566_v50 = vsel %vm562_vm15, %v561_v48, %v1538_v40 }
 0x11d   : > { %v1541_v44 = vpop.permute.xlu1 %1540 }
 0x11e   : > { %v1543_v45 = vunpack.i.h.bf16 %v1541_v44  ;;  %v1542_v46 = vunpack.i.l.bf16 %v1541_v44 }
 0x120   : > { %v570_v51 = vsel %vm567_vm0, %v565_v49, %v1542_v46  ;;  %v571_v52 = vsel %vm567_vm0, %v566_v50, %v1543_v45  ;;  %v1293_v45 = vsel %vm871_vm8, 1.0, %v1572_v59  ;;  %v1295_v49 = vsel %vm873_vm7, 1.0, %v1572_v59 }
 0x121   : > { %1394 = vmatprep.mubr.f32.mxu0 %v570_v51  ;;  %v1294_v51 = vsel %vm872_vm9, 1.0, %v1572_v59 }
 0x122   : > { %1395 = vmatmul.mubr.f32.gmra.mrb[2].mxu0 %v571_v52  ;;  %v1296_v52 = vsel %vm874_vm10, 1.0, %v1572_v59  ;;  %v753_v59 = vld [vmem:[%s1916_s7 + $0x8] sm:$0xff] }
 0x1e9   : > { %v1393_v58 = vpop.f32.mrb[0].mxu0 }
 0x1ea   : > { %v654_v61 = vpop.f32.mrb[1].mxu0  ;;  %v676_v62 = vsel %vm557_vm14, %v1393_v58, 0.0 }
 0x1eb   : > { %677 = vadd.xlane.f32.xlu1 %v676_v62  ;;  %v673_v63 = vsel %vm557_vm14, %v654_v61, 0.0 }
 0x1ec   : > { %674 = vadd.xlane.f32.xlu0 %v673_v63 }
 0x1ef   : > { %900 = vadd.xlane.f32.xlu1 %v899_v0 }
 0x1f3   : > { %906 = vadd.xlane.f32.xlu1 %v905_v7 }
 0x1f5   : > { %v1396_v1 = vpop.f32.mrb[2].mxu0 }
 0x1f6   : > { %v664_v4 = vpop.f32.mrb[3].mxu0  ;;  %v682_v10 = vsel %vm557_vm14, %v1396_v1, 0.0 }
 0x1f7   : > { %v679_v5 = vsel %vm557_vm14, %v664_v4, 0.0  ;;  %909 = vadd.xlane.f32.xlu1 %v908_v13 }
 0x1f8   : > { %680 = vadd.xlane.f32.xlu0 %v679_v5 }
 0x1fc   : > { %683 = vadd.xlane.f32.xlu0 %v682_v10  ;;  %v754_v10 = vld [vmem:[%s1916_s7 + $0x10] sm:$0xff] }
 0x200   : > { %903 = vadd.xlane.f32.xlu0 %v902_v12  ;;  %v755_v12 = vld [vmem:[%s1916_s7 + $0x18] sm:$0xff] }
 0x278   : > { %v678_v14 = vpop.xlane.xlu1 %677 }
 0x279   : > { %v687_v15 = vmul.f32 0.03125, %v678_v14  ;;  %v675_v16 = vpop.xlane.xlu0 %674 }
 0x27a   : > { %v686_v17 = vmul.f32 0.03125, %v675_v16 }
 0x27b   : > { %v1770_v18 = vsub.f32 %v1393_v58, %v687_v15  ;;  %v1475_v15 = vpack.c.bf16 %v755_v12, %v754_v10 }
 0x27c   : > { %v1772_v19 = vsub.f32 %v654_v61, %v686_v17  ;;  %v901_v23 = vpop.xlane.xlu1 %900  ;;  %v752_v61 = vld [vmem:[%s1916_s7] sm:$0xff] }
 0x27d   : > { %v695_v22 = vmul.f32 %v1770_v18, %v1770_v18  ;;  %v911_v26 = vadd.f32 1.0, %v901_v23  ;;  %v1471_v0 = vpack.c.bf16 %v753_v59, %v752_v61 }
 0x27e   : > { %v694_v20 = vmul.f32 %v1772_v19, %v1772_v19 }
 0x27f   : > { %v701_v24 = vsel %vm557_vm14, %v695_v22, 0.0  ;;  %1544 = vrsqrt.f32 %v911_v26  ;;  %1472 = vmatprep.subr.bf16.mxu1 %v1471_v0 }
 0x280   : > { %v698_v21 = vsel %vm557_vm14, %v694_v20, 0.0  ;;  %v907_v28 = vpop.xlane.xlu1 %906  ;;  %1474 = vmatpush3.bf16.msra.mxu1 %v1471_v0  ;;  %v1287_v0 = vld [vmem:[%s1915_s6] ss:$0 sm:$0xff] }
 0x281   : > { %699 = vadd.xlane.f32.xlu0 %v698_v21  ;;  %v913_v30 = vadd.f32 1.0, %v907_v28  ;;  %1476 = vmatprep.subr.bf16.mxu1 %v1475_v15 }
 0x283   : > { %1546 = vrsqrt.f32 %v913_v30 }
 0x284   : > { %v910_v35 = vpop.xlane.xlu1 %909  ;;  %1478 = vmatpush3.bf16.msra.mxu1 %v1475_v15 }
 0x285   : > { %702 = vadd.xlane.f32.xlu0 %v701_v24  ;;  %v681_v25 = vpop.xlane.xlu0 %680  ;;  %v914_v38 = vadd.f32 1.0, %v910_v35 }
 0x286   : > { %v688_v27 = vmul.f32 0.03125, %v681_v25 }
 0x287   : > { %1548 = vrsqrt.f32 %v914_v38 }
 0x288   : > { %v1780_v29 = vsub.f32 %v664_v4, %v688_v27  ;;  %v1479_v27 = vpack.c.bf16 %v1294_v51, %v1293_v45 }
 0x289   : > { %v684_v31 = vpop.xlane.xlu0 %683  ;;  %v1794_v44 = vpop.eup %1544 }
 0x28a   : > { %v689_v32 = vmul.f32 0.03125, %v684_v31  ;;  %v696_v33 = vmul.f32 %v1780_v29, %v1780_v29  ;;  %v936_v47 = vmul.f32 %v1794_v44, %v1738_v60  ;;  %v919_v48 = vmul.f32 %v1794_v44, %v1293_v45  ;;  %1481 = vmatprep.subr.msk.bf16.mxu1 %vm1843_vm11, %v1479_v27 }
 0x28c   : > { %v1785_v36 = vsub.f32 %v1396_v1, %v689_v32  ;;  %v704_v37 = vsel %vm557_vm14, %v696_v33, 0.0  ;;  %v940_v57 = vsel %vm562_vm15, %v936_v47, 0.0  ;;  %v923_v62 = vsel %vm562_vm15, %v919_v48, 0.0 }
 0x28d   : > { %705 = vadd.xlane.f32.xlu1 %v704_v37  ;;  %v904_v39 = vpop.xlane.xlu0 %903  ;;  %v1800_v46 = vpop.eup %1546 }
 0x28e   : > { %v697_v40 = vmul.f32 %v1785_v36, %v1785_v36  ;;  %v912_v41 = vadd.f32 1.0, %v904_v39  ;;  %v938_v53 = vmul.f32 %v1800_v46, %v1754_v6  ;;  %v921_v55 = vmul.f32 %v1800_v46, %v1295_v49 }
 0x290   : > { %v707_v43 = vsel %vm557_vm14, %v697_v40, 0.0  ;;  %1550 = vrsqrt.f32 %v912_v41  ;;  %v943_v3 = vsel %vm562_vm15, %v938_v53, 0.0  ;;  %v926_v7 = vsel %vm562_vm15, %v921_v55, 0.0  ;;  %v861_v40 = vld [vmem:[%s382_s14] sm:$0x1] }
 0x291   : > { %708 = vadd.xlane.f32.xlu0 %v707_v43  ;;  %v1806_v50 = vpop.eup %1548  ;;  %v1485_v41 = vpack.c.bf16 %v1296_v52, %v1295_v49 }
 0x292   : > { %v939_v58 = vmul.f32 %v1806_v50, %v1764_v11  ;;  %v922_v2 = vmul.f32 %v1806_v50, %v1296_v52 }
 0x294   : > { %v945_v14 = vsel %vm562_vm15, %v939_v58, 0.0  ;;  %v928_v16 = vsel %vm562_vm15, %v922_v2, 0.0 }
 0x29a   : > { %v1813_v56 = vpop.eup %1550 }
 0x29b   : > { %v937_v63 = vmul.f32 %v1813_v56, %v1760_v9  ;;  %v920_v1 = vmul.f32 %v1813_v56, %v1294_v51 }
 0x29d   : > { %v941_v4 = vsel %vm562_vm15, %v937_v63, 0.0  ;;  %v924_v5 = vsel %vm562_vm15, %v920_v1, 0.0 }
 0x29e   : > { %v942_v8 = vadd.f32 %v941_v4, %v940_v57  ;;  %v925_v13 = vadd.f32 %v924_v5, %v923_v62  ;;  %v1286_v62 = vld [vmem:[%s1914_s5] ss:$0 sm:$0xff] }
 0x2a0   : > { %v927_v17 = vadd.f32 %v926_v7, %v925_v13  ;;  %v944_v20 = vadd.f32 %v943_v3, %v942_v8 }
 0x2a2   : > { %v929_v21 = vadd.f32 %v928_v16, %v927_v17  ;;  %v946_v22 = vadd.f32 %v945_v14, %v944_v20 }
 0x2a4   : > { %v930_v23 = vrot.slane %v929_v21, 4  ;;  %v947_v24 = vrot.slane %v946_v22, 4 }
 0x2a6   : > { %v931_v25 = vadd.f32 %v930_v23, %v929_v21  ;;  %v948_v26 = vadd.f32 %v947_v24, %v946_v22 }
 0x2a8   : > { %v932_v28 = vrot.slane %v931_v25, 2  ;;  %v949_v30 = vrot.slane %v948_v26, 2 }
 0x2aa   : > { %v933_v32 = vadd.f32 %v932_v28, %v931_v25  ;;  %v950_v33 = vadd.f32 %v949_v30, %v948_v26 }
 0x2ac   : > { %v934_v35 = vrot.slane %v933_v32, 1  ;;  %v951_v37 = vrot.slane %v950_v33, 1 }
 0x2ae   : > { %v935_v38 = vadd.f32 %v934_v35, %v933_v32  ;;  %v952_v39 = vadd.f32 %v951_v37, %v950_v33  ;;  %v1075_v35 = vmul.f32 %v1806_v50, %v1806_v50 }
 0x2b0   : > { %v953_v42 = vmul.f32 %v952_v39, %v935_v38  ;;  %v1074_v38 = vmul.f32 %v1800_v46, %v1800_v46 }
 0x2b2   : > { %v954_v43 = vmul.f32 %v953_v42, %v861_v40 }
 0x2b4   : > { %v958_v21 = vrot.slane %v954_v43, %v869_v34 }
 0x2b6   : > { %v959_v23 = vmul.f32 %v1738_v60, %v958_v21  ;;  %v961_v24 = vmul.f32 %v1754_v6, %v958_v21  ;;  %v962_v54 = vmul.f32 %v1764_v11, %v958_v21  ;;  %v1288_v60 = vld [vmem:[%s1917_s8] ss:$0 sm:$0xff]  ;;  %v1072_v6 = vmul.f32 %v1794_v44, %v1794_v44 }
 0x30e   : > { %v700_v45 = vpop.xlane.xlu0 %699 }
 0x30f   : > { %v710_v47 = vmul.f32 0.03125, %v700_v45 }
 0x311   : > { %v714_v48 = vadd.f32 1e-05, %v710_v47 }
 0x312   : > { %v703_v51 = vpop.xlane.xlu0 %702 }
 0x313   : > { %1552 = vrsqrt.f32 %v714_v48  ;;  %v711_v53 = vmul.f32 0.03125, %v703_v51 }
 0x315   : > { %v715_v55 = vadd.f32 1e-05, %v711_v53 }
 0x317   : > { %1554 = vrsqrt.f32 %v715_v55 }
 0x31a   : > { %v706_v57 = vpop.xlane.xlu1 %705 }
 0x31b   : > { %v712_v58 = vmul.f32 0.03125, %v706_v57 }
 0x31d   : > { %v1553_v61 = vpop.eup %1552  ;;  %v716_v59 = vadd.f32 1e-05, %v712_v58 }
 0x31e   : > { %v709_v63 = vpop.xlane.xlu0 %708  ;;  %v722_v49 = vmul.f32 %v1553_v61, %v1772_v19 }
 0x31f   : > { %1556 = vrsqrt.f32 %v716_v59  ;;  %v713_v52 = vmul.f32 0.03125, %v709_v63 }
 0x320   : > { %v733_v1 = vmul.f32 %v1286_v62, %v722_v49 }
 0x321   : > { %v1555_v2 = vpop.eup %1554  ;;  %v717_v3 = vadd.f32 1e-05, %v713_v52 }
 0x322   : > { %v744_v4 = vadd.f32 %v1287_v0, %v733_v1  ;;  %v723_v5 = vmul.f32 %v1555_v2, %v1770_v18 }
 0x323   : > { %1558 = vrsqrt.f32 %v717_v3 }
 0x324   : > { %v748_v7 = vmax.f32 %v744_v4, 0.0  ;;  %v734_v8 = vmul.f32 %v1286_v62, %v723_v5 }
 0x326   : > { %1405 = vmatprep.mubr.msk.f32.mxu1 %vm557_vm14, %v748_v7  ;;  %v745_v10 = vadd.f32 %v1287_v0, %v734_v8 }
 0x328   : > { %v749_v12 = vmax.f32 %v745_v10, 0.0 }
 0x329   : > { %v1557_v19 = vpop.eup %1556 }
 0x32a   : > { %v724_v13 = vmul.f32 %v1557_v19, %v1780_v29  ;;  %1406 = vmatmul.mubr.msk.f32.vlgmr.msra.gmra.mrb[0].mxu1 %vm557_vm14, %v749_v12 }
 0x32b   : > { %1484 = vmatpush3.bf16.xpose.msk.msra.mxu1 %vm1843_vm11, %v1479_v27 }
 0x32c   : > { %v735_v14 = vmul.f32 %v1286_v62, %v724_v13  ;;  %1487 = vmatprep.subr.msk.bf16.mxu1 %vm1843_vm11, %v1485_v41 }
 0x32d   : > { %v1559_v18 = vpop.eup %1558 }
 0x32e   : > { %v725_v15 = vmul.f32 %v1559_v18, %v1785_v36  ;;  %v746_v16 = vadd.f32 %v1287_v0, %v735_v14  ;;  %v960_v36 = vmul.f32 %v1760_v9, %v958_v21  ;;  %v1073_v9 = vmul.f32 %v1813_v56, %v1813_v56 }
 0x330   : > { %v750_v17 = vmax.f32 %v746_v16, 0.0  ;;  %v736_v20 = vmul.f32 %v1286_v62, %v725_v15 }
 0x332   : > { %1408 = vmatprep.mubr.msk.f32.mxu1 %vm557_vm14, %v750_v17  ;;  %v747_v29 = vadd.f32 %v1287_v0, %v736_v20 }
 0x333   : > { %1490 = vmatpush3.bf16.xpose.msk.msra.mxu1 %vm1843_vm11, %v1485_v41 }
 0x334   : > { %v751_v22 = vmax.f32 %v747_v29, 0.0 }
 0x336   : > { %1409 = vmatmul.mubr.msk.f32.gmra.mrb[2].mxu1 %vm557_vm14, %v751_v22 }
 0x337   : > { %1419 = vmatprep.mubr.msk.f32.mxu1 %vm562_vm15, %v959_v23 }
 0x33a   : > { %1420 = vmatmul.mubr.msk.f32.vlgmr.msra.gmra.mrb[4].mxu1 %vm562_vm15, %v960_v36 }
 0x33b   : > { %1422 = vmatprep.mubr.msk.f32.mxu1 %vm562_vm15, %v961_v24 }
 0x33e   : > { %1423 = vmatmul.mubr.msk.f32.gmra.mrb[6].mxu1 %vm562_vm15, %v962_v54 }
 0x3fd   : > { %v1407_v34 = vpop.f32.mrb[0].mxu1 }
 0x3fe   : > { %v847_v25 = vadd.f32 %v1407_v34, %v1288_v60  ;;  %v841_v26 = vpop.f32.mrb[1].mxu1 }
 0x3ff   : > { %v842_v27 = vadd.f32 %v1288_v60, %v841_v26 }
 0x400   : > { %v1077_v28 = vmul.f32 %v1073_v9, %v847_v25 }
 0x401   : > { %v1491_v30 = vpack.c.bf16 %v847_v25, %v842_v27  ;;  %v1076_v31 = vmul.f32 %v1072_v6, %v842_v27 }
 0x403   : > { %1492 = vmatprep.subr.bf16.mxu1 %v1491_v30 }
 0x404   : > { %1494 = vmatpush3.bf16.msra.mxu1 %v1491_v30 }
 0x409   : > { %v1410_v11 = vpop.f32.mrb[2].mxu1 }
 0x40a   : > { %v857_v32 = vadd.f32 %v1410_v11, %v1288_v60  ;;  %v851_v33 = vpop.f32.mrb[3].mxu1 }
 0x40b   : > { %v852_v37 = vadd.f32 %v1288_v60, %v851_v33 }
 0x40c   : > { %v1079_v56 = vmul.f32 %v1075_v35, %v857_v32 }
 0x40d   : > { %v1495_v39 = vpack.c.bf16 %v857_v32, %v852_v37  ;;  %v1421_v40 = vpop.f32.mrb[4].mxu1  ;;  %v1078_v44 = vmul.f32 %v1074_v38, %v852_v37 }
 0x40e   : > { %v1053_v41 = vpop.f32.mrb[5].mxu1 }
 0x40f   : > { %1496 = vmatprep.subr.bf16.mxu1 %v1495_v39  ;;  %1433 = vmatprep.mubr.msk.f32.mxu1 %vm557_vm14, %v1053_v41 }
 0x410   : > { %1498 = vmatpush3.bf16.msra.mxu1 %v1495_v39 }
 0x411   : > { %v1424_v42 = vpop.f32.mrb[6].mxu1 }
 0x412   : > { %v1063_v43 = vpop.f32.mrb[7].mxu1 }
 0x413   : > { %1434 = vmatmul.mubr.msk.f32.vlgmr.msra.gmra.mrb[8].mxu1 %vm557_vm14, %v1421_v40 }
 0x414   : > { %1436 = vmatprep.mubr.msk.f32.mxu1 %vm557_vm14, %v1063_v43 }
 0x417   : > { %1437 = vmatmul.mubr.msk.f32.gmra.mrb[10].mxu1 %vm557_vm14, %v1424_v42 }
 0x4e6   : > { %v1435_v50 = vpop.f32.mrb[8].mxu1 }
 0x4e7   : > { %v1164_v46 = vadd.f32 %v1435_v50, %v1077_v28  ;;  %v1158_v45 = vpop.f32.mrb[9].mxu1 }
 0x4e8   : > { %v1159_v47 = vadd.f32 %v1158_v45, %v1076_v31 }
 0x4e9   : > { %v1178_v53 = vmax.f32 %v1164_v46, 0.0 }
 0x4ea   : > { %v1177_v48 = vmax.f32 %v1159_v47, 0.0  ;;  %v1438_v51 = vpop.f32.mrb[10].mxu1 }
 0x4eb   : > { %v1174_v55 = vadd.f32 %v1438_v51, %v1079_v56  ;;  %v1168_v57 = vpop.f32.mrb[11].mxu1  ;;  %1182 = vst.msk [vmem:[%s387_s22 + $0x8] sm:$0xff] %vm557_vm14, %v1178_v53 }
 0x4ec   : > { %1181 = vst.msk [vmem:[%s387_s22] sm:$0xff] %vm557_vm14, %v1177_v48  ;;  %v1169_v58 = vadd.f32 %v1168_v57, %v1078_v44 }
 0x4ed   : > { %v1180_v59 = vmax.f32 %v1174_v55, 0.0 }
 0x4ee   : > { %v1179_v61 = vmax.f32 %v1169_v58, 0.0 }
 0x4ef   : > { %1184 = vst.msk [vmem:[%s387_s22 + $0x18] sm:$0xff] %vm557_vm14, %v1180_v59 }
 0x4f0   : > { %1183 = vst.msk [vmem:[%s387_s22 + $0x10] sm:$0xff] %vm557_vm14, %v1179_v61 }
 0x4f1 PF: > { %s19_s30 = sadd.s32 1, %s1566_s30  }
 0x4f2   : > { %p16_p5 = scmp.ge.s32.totalorder %s19_s30, 4  }
 0x4f4   :  { %18 = sbr.rel (!%p16_p5) target bundleno = 1 (0x1), region = 95 }

</bundles_post_ra>
